<compile_context>
chip_gen: v6e
topology: v6e:2x2x1
jax: 0.10.0
libtpu: 0.0.40
codegen_flags: <defaults>
</compile_context>

<pallas_src>
import jax
import jax.numpy as jnp
from jax.experimental import pallas as pl
from jax.experimental.pallas import tpu as pltpu

Z_DIM = 3
U_DIM = 16
HIDDEN = 32
POLY_ORDER = 2
LIB_DIM = 1 + Z_DIM + (Z_DIM * (Z_DIM + 1)) // 2   # constant + linear + quadratic = 10
# TODO(synk): poly_order=2 / use_sine=False / 'sig' hard-coded; other library
# configs would just add more broadcast-FMA terms in the dz_pred block.


def _dot(a, b):
    return jnp.dot(a, b, preferred_element_type=jnp.float32)


def _sigmoid(v):
    # tanh form keeps the transcendental on the EUP slot and avoids a VPU divide.
    return 0.5 * jnp.tanh(0.5 * v) + 0.5


def sindy_ae_kernel(xd_ref,
                    we1, be1, we2, be2, we3, be3,
                    wd1, bd1, wd2, bd2, wd3, bd3,
                    cm_ref,
                    loss_ref):
    # Lane-dense layout: columns = samples (batch*T tile), rows = features.
    xT = xd_ref[0:U_DIM, :]               # (16, TILE_N)
    dxT = xd_ref[U_DIM:2 * U_DIM, :]      # (16, TILE_N)
    tile_n = xT.shape[1]

    # ---- encoder forward (keep sigmoid derivatives for the chain rule) ----
    a1 = _sigmoid(_dot(we1[...], xT) + be1[...])     # (32, T)
    d1 = a1 * (1.0 - a1)
    a2 = _sigmoid(_dot(we2[...], a1) + be2[...])     # (32, T)
    d2 = a2 * (1.0 - a2)
    z = _dot(we3[...], a2) + be3[...]                # (3, T)

    # ---- dz = get_derivative(x, dx, encoder) ----
    dz = d1 * _dot(we1[...], dxT)
    dz = d2 * _dot(we2[...], dz)
    dz = _dot(we3[...], dz)                          # (3, T)

    # ---- decoder forward ----
    g1 = _sigmoid(_dot(wd1[...], z) + bd1[...])      # (32, T)
    e1 = g1 * (1.0 - g1)
    g2 = _sigmoid(_dot(wd2[...], g1) + bd2[...])     # (32, T)
    e2 = g2 * (1.0 - g2)
    x_recon = _dot(wd3[...], g2) + bd3[...]          # (16, T)

    # ---- dz_pred = sindy_library(z) @ (coef*mask), folded algebraically ----
    cm = cm_ref[...]                                 # (3, 10) = (coef*mask)^T
    acc = jnp.broadcast_to(cm[:, 0:1], (Z_DIM, tile_n))        # constant term
    k = 1
    for i in range(Z_DIM):                                      # linear terms
        acc = acc + cm[:, k:k + 1] * z[i:i + 1, :]
        k += 1
    for i in range(Z_DIM):                                      # quadratic terms
        for j in range(i, Z_DIM):
            acc = acc + cm[:, k:k + 1] * (z[i:i + 1, :] * z[j:j + 1, :])
            k += 1
    dz_pred = acc                                    # (3, T)

    # ---- dx_pred = get_derivative(z, dz_pred, decoder) ----
    dxp = e1 * _dot(wd1[...], dz_pred)
    dxp = e2 * _dot(wd2[...], dxp)
    dx_pred = _dot(wd3[...], dxp)                    # (16, T)

    # ---- per-column partial loss sums, stacked into one lane-dense block ----
    r_rec = x_recon - xT
    r_dx = dx_pred - dxT
    r_dz = dz_pred - dz
    loss_ref[...] = jnp.concatenate(
        [jnp.sum(r_rec * r_rec, axis=0, keepdims=True),
         jnp.sum(r_dx * r_dx, axis=0, keepdims=True),
         jnp.sum(r_dz * r_dz, axis=0, keepdims=True)], axis=0)   # (3, TILE_N)


def sindy_ae_forward(params, x, dx, lambdas, tile_n=2048):
    """Returns (l_recon, l_dx, l_dz, l_reg) like Net.forward."""
    assert tile_n % 128 == 0
    b, t, u = x.shape
    assert u == U_DIM
    n = b * t
    xf = x.reshape(n, u).astype(jnp.float32)
    dxf = dx.reshape(n, u).astype(jnp.float32)

    # Tile size: big lane-dense tiles, but no bigger than needed for tiny N.
    tile = max(128, min(tile_n, ((n + 127) // 128) * 128))
    n_pad = ((n + tile - 1) // tile) * tile
    num_tiles = n_pad // tile

    # Single lane-dense (2*U_DIM, N_pad) input slab (x rows 0:16, dx rows 16:32).
    xd = jnp.concatenate([xf, dxf], axis=1)          # (N, 2U)
    xd = jnp.pad(xd, ((0, n_pad - n), (0, 0)))
    xdT = xd.T                                        # (2U, N_pad)

    cmT = (params['coef'] * params['mask']).astype(jnp.float32).T  # (3, 10), hoisted

    def col(v):   # biases as columns -> broadcast along lanes inside the kernel
        return v.reshape(-1, 1).astype(jnp.float32)

    def mat(v):
        return v.astype(jnp.float32)

    weight_args = (
        mat(params['we1']), col(params['be1']),
        mat(params['we2']), col(params['be2']),
        mat(params['we3']), col(params['be3']),
        mat(params['wd1']), col(params['bd1']),
        mat(params['wd2']), col(params['bd2']),
        mat(params['wd3']), col(params['bd3']),
        cmT,
    )

    in_specs = [pl.BlockSpec((2 * U_DIM, tile), lambda i: (0, i))]
    in_specs += [pl.BlockSpec(a.shape, lambda i: (0, 0)) for a in weight_args]

    out_specs = pl.BlockSpec((3, tile), lambda i: (0, i))
    out_shape = jax.ShapeDtypeStruct((3, n_pad), jnp.float32)

    grid_spec = pltpu.PrefetchScalarGridSpec(
        num_scalar_prefetch=0,
        grid=(num_tiles,),
        in_specs=in_specs,
        out_specs=out_specs,
    )

    parts = pl.pallas_call(
        sindy_ae_kernel,
        out_shape=out_shape,
        grid_spec=grid_spec,
        compiler_params=pltpu.CompilerParams(
            dimension_semantics=("parallel",),
            vmem_limit_bytes=32 * 1024 * 1024,
        ),
    )(xdT, *weight_args)

    # Final reduction over the valid columns only (padding excluded exactly).
    sums = jnp.sum(parts[:, :n], axis=1)             # (3,): rec, dx, dz
    s_rec, s_dx, s_dz = sums[0], sums[1], sums[2]

    lam = lambdas.astype(jnp.float32)
    l_recon = s_rec / (n * U_DIM)
    l_dx = lam[0] * s_dx / (n * U_DIM)
    l_dz = lam[1] * s_dz / (n * Z_DIM)
    l_reg = lam[2] * jnp.mean(jnp.abs(params['coef']))   # data-independent -> wrapper
    return l_recon, l_dx, l_dz, l_reg


def init_params(key):
    """Deterministic synthetic init, PyTorch nn.Linear shapes: W (out, in), b (out,)."""
    ks = jax.random.split(key, 7)

    def lin(k, fan_in, fan_out):
        k1, k2 = jax.random.split(k)
        bound = 1.0 / jnp.sqrt(jnp.float32(fan_in))
        w = jax.random.uniform(k1, (fan_out, fan_in), jnp.float32, -bound, bound)
        b = jax.random.uniform(k2, (fan_out,), jnp.float32, -bound, bound)
        return w, b

    we1, be1 = lin(ks[0], U_DIM, HIDDEN)
    we2, be2 = lin(ks[1], HIDDEN, HIDDEN)
    we3, be3 = lin(ks[2], HIDDEN, Z_DIM)
    wd1, bd1 = lin(ks[3], Z_DIM, HIDDEN)
    wd2, bd2 = lin(ks[4], HIDDEN, HIDDEN)
    wd3, bd3 = lin(ks[5], HIDDEN, U_DIM)
    xavier_std = jnp.sqrt(2.0 / (LIB_DIM + Z_DIM))
    coef = xavier_std * jax.random.normal(ks[6], (LIB_DIM, Z_DIM), jnp.float32)
    mask = jnp.ones((LIB_DIM, Z_DIM), jnp.float32)
    return dict(we1=we1, be1=be1, we2=we2, be2=be2, we3=we3, be3=be3,
                wd1=wd1, bd1=bd1, wd2=wd2, bd2=bd2, wd3=wd3, bd3=bd3,
                coef=coef, mask=mask)


def reference_forward(params, x, dx, lambdas):
    """Pure-JAX reference mirroring the PyTorch module (for verification)."""
    p = params
    b, t, u = x.shape
    xf = x.reshape(-1, u).astype(jnp.float32)
    dxf = dx.reshape(-1, u).astype(jnp.float32)
    sig = lambda v: 1.0 / (1.0 + jnp.exp(-v))

    pre1 = xf @ p['we1'].T + p['be1']; h1 = sig(pre1); d1 = h1 * (1 - h1)
    pre2 = h1 @ p['we2'].T + p['be2']; h2 = sig(pre2); d2 = h2 * (1 - h2)
    z = h2 @ p['we3'].T + p['be3']

    dz = d1 * (dxf @ p['we1'].T); dz = d2 * (dz @ p['we2'].T); dz = dz @ p['we3'].T

    dp1 = z @ p['wd1'].T + p['bd1']; g1 = sig(dp1); e1 = g1 * (1 - g1)
    dp2 = g1 @ p['wd2'].T + p['bd2']; g2 = sig(dp2); e2 = g2 * (1 - g2)
    x_recon = g2 @ p['wd3'].T + p['bd3']

    cols = [jnp.ones((xf.shape[0], 1), jnp.float32)]
    for i in range(Z_DIM):
        cols.append(z[:, i:i + 1])
    for i in range(Z_DIM):
        for j in range(i, Z_DIM):
            cols.append(z[:, i:i + 1] * z[:, j:j + 1])
    theta = jnp.concatenate(cols, axis=1)
    dz_pred = theta @ (p['coef'] * p['mask'])

    dxp = e1 * (dz_pred @ p['wd1'].T); dxp = e2 * (dxp @ p['wd2'].T)
    dx_pred = dxp @ p['wd3'].T

    l_recon = jnp.mean((x_recon - xf) ** 2)
    l_dx = lambdas[0] * jnp.mean((dx_pred - dxf) ** 2)
    l_dz = lambdas[1] * jnp.mean((dz_pred - dz) ** 2)
    l_reg = lambdas[2] * jnp.mean(jnp.abs(p['coef']))
    return jnp.stack([l_recon, l_dx, l_dz, l_reg])


if __name__ == "__main__":
    key = jax.random.PRNGKey(0)
    kp, kx, kd = jax.random.split(key, 3)

    params = init_params(kp)
    batch, T = 2, 8
    x = jax.random.normal(kx, (batch, T, U_DIM), jnp.float32)
    dx = jax.random.normal(kd, (batch, T, U_DIM), jnp.float32)
    lambdas = jnp.array([0.1, 0.05, 1e-4], jnp.float32)

    losses = sindy_ae_forward(params, x, dx, lambdas)
    losses = jax.block_until_ready(jnp.stack(losses))

    ref = jax.block_until_ready(reference_forward(params, x, dx, lambdas))
    assert jnp.allclose(losses, ref, rtol=2e-3, atol=1e-5), (losses, ref)

    print("KERNEL_OK")
</pallas_src>

<mosaic_0001>
module attributes {stable_mosaic.version = 11 : i64} {
  func.func @sindy_ae_kernel(%arg0: i32, %arg1: memref<32x128xf32, #tpu.memory_space<vmem>>, %arg2: memref<32x16xf32, #tpu.memory_space<vmem>>, %arg3: memref<32x1xf32, #tpu.memory_space<vmem>>, %arg4: memref<32x32xf32, #tpu.memory_space<vmem>>, %arg5: memref<32x1xf32, #tpu.memory_space<vmem>>, %arg6: memref<3x32xf32, #tpu.memory_space<vmem>>, %arg7: memref<3x1xf32, #tpu.memory_space<vmem>>, %arg8: memref<32x3xf32, #tpu.memory_space<vmem>>, %arg9: memref<32x1xf32, #tpu.memory_space<vmem>>, %arg10: memref<32x32xf32, #tpu.memory_space<vmem>>, %arg11: memref<32x1xf32, #tpu.memory_space<vmem>>, %arg12: memref<16x32xf32, #tpu.memory_space<vmem>>, %arg13: memref<16x1xf32, #tpu.memory_space<vmem>>, %arg14: memref<3x10xf32, #tpu.memory_space<vmem>>, %arg15: memref<3x128xf32, #tpu.memory_space<vmem>>) attributes {dimension_semantics = [#tpu.dimension_semantics<parallel>], iteration_bounds = array<i64: 1>, scalar_prefetch = 0 : i64, scratch_operands = 0 : i64, tpu.core_type = #tpu.core_type<tc>, window_params = [{transform_indices = @transform_0, window_bounds = array<i64: 32, 128>}, {pipeline_mode = #tpu.pipeline_mode<synchronous>, transform_indices = @transform_1, window_bounds = array<i64: 32, 16>}, {pipeline_mode = #tpu.pipeline_mode<synchronous>, transform_indices = @transform_2, window_bounds = array<i64: 32, 1>}, {pipeline_mode = #tpu.pipeline_mode<synchronous>, transform_indices = @transform_3, window_bounds = array<i64: 32, 32>}, {pipeline_mode = #tpu.pipeline_mode<synchronous>, transform_indices = @transform_4, window_bounds = array<i64: 32, 1>}, {pipeline_mode = #tpu.pipeline_mode<synchronous>, transform_indices = @transform_5, window_bounds = array<i64: 3, 32>}, {pipeline_mode = #tpu.pipeline_mode<synchronous>, transform_indices = @transform_6, window_bounds = array<i64: 3, 1>}, {pipeline_mode = #tpu.pipeline_mode<synchronous>, transform_indices = @transform_7, window_bounds = array<i64: 32, 3>}, {pipeline_mode = #tpu.pipeline_mode<synchronous>, transform_indices = @transform_8, window_bounds = array<i64: 32, 1>}, {pipeline_mode = #tpu.pipeline_mode<synchronous>, transform_indices = @transform_9, window_bounds = array<i64: 32, 32>}, {pipeline_mode = #tpu.pipeline_mode<synchronous>, transform_indices = @transform_10, window_bounds = array<i64: 32, 1>}, {pipeline_mode = #tpu.pipeline_mode<synchronous>, transform_indices = @transform_11, window_bounds = array<i64: 16, 32>}, {pipeline_mode = #tpu.pipeline_mode<synchronous>, transform_indices = @transform_12, window_bounds = array<i64: 16, 1>}, {pipeline_mode = #tpu.pipeline_mode<synchronous>, transform_indices = @transform_13, window_bounds = array<i64: 3, 10>}, {transform_indices = @transform_14, window_bounds = array<i64: 3, 128>}]} {
    %c0 = arith.constant 0 : index
    %c0_0 = arith.constant 0 : index
    %0 = vector.load %arg1[%c0, %c0_0] : memref<32x128xf32, #tpu.memory_space<vmem>>, vector<16x128xf32>
    %c16 = arith.constant 16 : index
    %c0_1 = arith.constant 0 : index
    %1 = vector.load %arg1[%c16, %c0_1] : memref<32x128xf32, #tpu.memory_space<vmem>>, vector<16x128xf32>
    %c0_2 = arith.constant 0 : index
    %c0_3 = arith.constant 0 : index
    %2 = vector.load %arg2[%c0_2, %c0_3] : memref<32x16xf32, #tpu.memory_space<vmem>>, vector<32x16xf32>
    %cst = arith.constant dense<0.000000e+00> : vector<32x128xf32>
    %3 = tpu.matmul %2, %0, %cst {dimension_numbers = #tpu.dot_dimension_numbers<[1], [0], [0], [1], [0, 0, 1, 1], [], []>} : vector<32x16xf32>, vector<16x128xf32>, vector<32x128xf32> -> vector<32x128xf32>
    %c0_4 = arith.constant 0 : index
    %c0_5 = arith.constant 0 : index
    %4 = vector.load %arg3[%c0_4, %c0_5] : memref<32x1xf32, #tpu.memory_space<vmem>>, vector<32x1xf32>
    %5 = vector.broadcast %4 : vector<32x1xf32> to vector<32x128xf32>
    %6 = arith.addf %3, %5 : vector<32x128xf32>
    %cst_6 = arith.constant 5.000000e-01 : f32
    %7 = vector.broadcast %cst_6 : f32 to vector<32x128xf32>
    %8 = arith.mulf %7, %6 : vector<32x128xf32>
    %9 = math.tanh %8 : vector<32x128xf32>
    %cst_7 = arith.constant 5.000000e-01 : f32
    %10 = vector.broadcast %cst_7 : f32 to vector<32x128xf32>
    %11 = arith.mulf %10, %9 : vector<32x128xf32>
    %cst_8 = arith.constant 5.000000e-01 : f32
    %12 = vector.broadcast %cst_8 : f32 to vector<32x128xf32>
    %13 = arith.addf %11, %12 : vector<32x128xf32>
    %cst_9 = arith.constant 1.000000e+00 : f32
    %14 = vector.broadcast %cst_9 : f32 to vector<32x128xf32>
    %15 = arith.subf %14, %13 : vector<32x128xf32>
    %16 = arith.mulf %13, %15 : vector<32x128xf32>
    %c0_10 = arith.constant 0 : index
    %c0_11 = arith.constant 0 : index
    %17 = vector.load %arg4[%c0_10, %c0_11] : memref<32x32xf32, #tpu.memory_space<vmem>>, vector<32x32xf32>
    %cst_12 = arith.constant dense<0.000000e+00> : vector<32x128xf32>
    %18 = tpu.matmul %17, %13, %cst_12 {dimension_numbers = #tpu.dot_dimension_numbers<[1], [0], [0], [1], [0, 0, 1, 1], [], []>} : vector<32x32xf32>, vector<32x128xf32>, vector<32x128xf32> -> vector<32x128xf32>
    %c0_13 = arith.constant 0 : index
    %c0_14 = arith.constant 0 : index
    %19 = vector.load %arg5[%c0_13, %c0_14] : memref<32x1xf32, #tpu.memory_space<vmem>>, vector<32x1xf32>
    %20 = vector.broadcast %19 : vector<32x1xf32> to vector<32x128xf32>
    %21 = arith.addf %18, %20 : vector<32x128xf32>
    %cst_15 = arith.constant 5.000000e-01 : f32
    %22 = vector.broadcast %cst_15 : f32 to vector<32x128xf32>
    %23 = arith.mulf %22, %21 : vector<32x128xf32>
    %24 = math.tanh %23 : vector<32x128xf32>
    %cst_16 = arith.constant 5.000000e-01 : f32
    %25 = vector.broadcast %cst_16 : f32 to vector<32x128xf32>
    %26 = arith.mulf %25, %24 : vector<32x128xf32>
    %cst_17 = arith.constant 5.000000e-01 : f32
    %27 = vector.broadcast %cst_17 : f32 to vector<32x128xf32>
    %28 = arith.addf %26, %27 : vector<32x128xf32>
    %cst_18 = arith.constant 1.000000e+00 : f32
    %29 = vector.broadcast %cst_18 : f32 to vector<32x128xf32>
    %30 = arith.subf %29, %28 : vector<32x128xf32>
    %31 = arith.mulf %28, %30 : vector<32x128xf32>
    %c0_19 = arith.constant 0 : index
    %c0_20 = arith.constant 0 : index
    %32 = vector.load %arg6[%c0_19, %c0_20] : memref<3x32xf32, #tpu.memory_space<vmem>>, vector<3x32xf32>
    %cst_21 = arith.constant dense<0.000000e+00> : vector<3x128xf32>
    %33 = tpu.matmul %32, %28, %cst_21 {dimension_numbers = #tpu.dot_dimension_numbers<[1], [0], [0], [1], [0, 0, 1, 1], [], []>} : vector<3x32xf32>, vector<32x128xf32>, vector<3x128xf32> -> vector<3x128xf32>
    %c0_22 = arith.constant 0 : index
    %c0_23 = arith.constant 0 : index
    %34 = vector.load %arg7[%c0_22, %c0_23] : memref<3x1xf32, #tpu.memory_space<vmem>>, vector<3x1xf32>
    %35 = vector.broadcast %34 : vector<3x1xf32> to vector<3x128xf32>
    %36 = arith.addf %33, %35 : vector<3x128xf32>
    %c0_24 = arith.constant 0 : index
    %c0_25 = arith.constant 0 : index
    %37 = vector.load %arg2[%c0_24, %c0_25] : memref<32x16xf32, #tpu.memory_space<vmem>>, vector<32x16xf32>
    %cst_26 = arith.constant dense<0.000000e+00> : vector<32x128xf32>
    %38 = tpu.matmul %37, %1, %cst_26 {dimension_numbers = #tpu.dot_dimension_numbers<[1], [0], [0], [1], [0, 0, 1, 1], [], []>} : vector<32x16xf32>, vector<16x128xf32>, vector<32x128xf32> -> vector<32x128xf32>
    %39 = arith.mulf %16, %38 : vector<32x128xf32>
    %c0_27 = arith.constant 0 : index
    %c0_28 = arith.constant 0 : index
    %40 = vector.load %arg4[%c0_27, %c0_28] : memref<32x32xf32, #tpu.memory_space<vmem>>, vector<32x32xf32>
    %cst_29 = arith.constant dense<0.000000e+00> : vector<32x128xf32>
    %41 = tpu.matmul %40, %39, %cst_29 {dimension_numbers = #tpu.dot_dimension_numbers<[1], [0], [0], [1], [0, 0, 1, 1], [], []>} : vector<32x32xf32>, vector<32x128xf32>, vector<32x128xf32> -> vector<32x128xf32>
    %42 = arith.mulf %31, %41 : vector<32x128xf32>
    %c0_30 = arith.constant 0 : index
    %c0_31 = arith.constant 0 : index
    %43 = vector.load %arg6[%c0_30, %c0_31] : memref<3x32xf32, #tpu.memory_space<vmem>>, vector<3x32xf32>
    %cst_32 = arith.constant dense<0.000000e+00> : vector<3x128xf32>
    %44 = tpu.matmul %43, %42, %cst_32 {dimension_numbers = #tpu.dot_dimension_numbers<[1], [0], [0], [1], [0, 0, 1, 1], [], []>} : vector<3x32xf32>, vector<32x128xf32>, vector<3x128xf32> -> vector<3x128xf32>
    %c0_33 = arith.constant 0 : index
    %c0_34 = arith.constant 0 : index
    %45 = vector.load %arg8[%c0_33, %c0_34] : memref<32x3xf32, #tpu.memory_space<vmem>>, vector<32x3xf32>
    %cst_35 = arith.constant dense<0.000000e+00> : vector<32x128xf32>
    %46 = tpu.matmul %45, %36, %cst_35 {dimension_numbers = #tpu.dot_dimension_numbers<[1], [0], [0], [1], [0, 0, 1, 1], [], []>} : vector<32x3xf32>, vector<3x128xf32>, vector<32x128xf32> -> vector<32x128xf32>
    %c0_36 = arith.constant 0 : index
    %c0_37 = arith.constant 0 : index
    %47 = vector.load %arg9[%c0_36, %c0_37] : memref<32x1xf32, #tpu.memory_space<vmem>>, vector<32x1xf32>
    %48 = vector.broadcast %47 : vector<32x1xf32> to vector<32x128xf32>
    %49 = arith.addf %46, %48 : vector<32x128xf32>
    %cst_38 = arith.constant 5.000000e-01 : f32
    %50 = vector.broadcast %cst_38 : f32 to vector<32x128xf32>
    %51 = arith.mulf %50, %49 : vector<32x128xf32>
    %52 = math.tanh %51 : vector<32x128xf32>
    %cst_39 = arith.constant 5.000000e-01 : f32
    %53 = vector.broadcast %cst_39 : f32 to vector<32x128xf32>
    %54 = arith.mulf %53, %52 : vector<32x128xf32>
    %cst_40 = arith.constant 5.000000e-01 : f32
    %55 = vector.broadcast %cst_40 : f32 to vector<32x128xf32>
    %56 = arith.addf %54, %55 : vector<32x128xf32>
    %cst_41 = arith.constant 1.000000e+00 : f32
    %57 = vector.broadcast %cst_41 : f32 to vector<32x128xf32>
    %58 = arith.subf %57, %56 : vector<32x128xf32>
    %59 = arith.mulf %56, %58 : vector<32x128xf32>
    %c0_42 = arith.constant 0 : index
    %c0_43 = arith.constant 0 : index
    %60 = vector.load %arg10[%c0_42, %c0_43] : memref<32x32xf32, #tpu.memory_space<vmem>>, vector<32x32xf32>
    %cst_44 = arith.constant dense<0.000000e+00> : vector<32x128xf32>
    %61 = tpu.matmul %60, %56, %cst_44 {dimension_numbers = #tpu.dot_dimension_numbers<[1], [0], [0], [1], [0, 0, 1, 1], [], []>} : vector<32x32xf32>, vector<32x128xf32>, vector<32x128xf32> -> vector<32x128xf32>
    %c0_45 = arith.constant 0 : index
    %c0_46 = arith.constant 0 : index
    %62 = vector.load %arg11[%c0_45, %c0_46] : memref<32x1xf32, #tpu.memory_space<vmem>>, vector<32x1xf32>
    %63 = vector.broadcast %62 : vector<32x1xf32> to vector<32x128xf32>
    %64 = arith.addf %61, %63 : vector<32x128xf32>
    %cst_47 = arith.constant 5.000000e-01 : f32
    %65 = vector.broadcast %cst_47 : f32 to vector<32x128xf32>
    %66 = arith.mulf %65, %64 : vector<32x128xf32>
    %67 = math.tanh %66 : vector<32x128xf32>
    %cst_48 = arith.constant 5.000000e-01 : f32
    %68 = vector.broadcast %cst_48 : f32 to vector<32x128xf32>
    %69 = arith.mulf %68, %67 : vector<32x128xf32>
    %cst_49 = arith.constant 5.000000e-01 : f32
    %70 = vector.broadcast %cst_49 : f32 to vector<32x128xf32>
    %71 = arith.addf %69, %70 : vector<32x128xf32>
    %cst_50 = arith.constant 1.000000e+00 : f32
    %72 = vector.broadcast %cst_50 : f32 to vector<32x128xf32>
    %73 = arith.subf %72, %71 : vector<32x128xf32>
    %74 = arith.mulf %71, %73 : vector<32x128xf32>
    %c0_51 = arith.constant 0 : index
    %c0_52 = arith.constant 0 : index
    %75 = vector.load %arg12[%c0_51, %c0_52] : memref<16x32xf32, #tpu.memory_space<vmem>>, vector<16x32xf32>
    %cst_53 = arith.constant dense<0.000000e+00> : vector<16x128xf32>
    %76 = tpu.matmul %75, %71, %cst_53 {dimension_numbers = #tpu.dot_dimension_numbers<[1], [0], [0], [1], [0, 0, 1, 1], [], []>} : vector<16x32xf32>, vector<32x128xf32>, vector<16x128xf32> -> vector<16x128xf32>
    %c0_54 = arith.constant 0 : index
    %c0_55 = arith.constant 0 : index
    %77 = vector.load %arg13[%c0_54, %c0_55] : memref<16x1xf32, #tpu.memory_space<vmem>>, vector<16x1xf32>
    %78 = vector.broadcast %77 : vector<16x1xf32> to vector<16x128xf32>
    %79 = arith.addf %76, %78 : vector<16x128xf32>
    %c0_56 = arith.constant 0 : index
    %c0_57 = arith.constant 0 : index
    %80 = vector.load %arg14[%c0_56, %c0_57] : memref<3x10xf32, #tpu.memory_space<vmem>>, vector<3x10xf32>
    %81 = vector.extract_strided_slice %80 {offsets = [0, 0], sizes = [3, 1], strides = [1, 1]} : vector<3x10xf32> to vector<3x1xf32>
    %82 = vector.shape_cast %81 : vector<3x1xf32> to vector<3x1xf32>
    %83 = vector.broadcast %82 : vector<3x1xf32> to vector<3x128xf32>
    %84 = vector.extract_strided_slice %80 {offsets = [0, 1], sizes = [3, 1], strides = [1, 1]} : vector<3x10xf32> to vector<3x1xf32>
    %85 = vector.extract_strided_slice %36 {offsets = [0, 0], sizes = [1, 128], strides = [1, 1]} : vector<3x128xf32> to vector<1x128xf32>
    %86 = vector.broadcast %84 : vector<3x1xf32> to vector<3x128xf32>
    %87 = vector.broadcast %85 : vector<1x128xf32> to vector<3x128xf32>
    %88 = arith.mulf %86, %87 : vector<3x128xf32>
    %89 = arith.addf %83, %88 : vector<3x128xf32>
    %90 = vector.extract_strided_slice %80 {offsets = [0, 2], sizes = [3, 1], strides = [1, 1]} : vector<3x10xf32> to vector<3x1xf32>
    %91 = vector.extract_strided_slice %36 {offsets = [1, 0], sizes = [1, 128], strides = [1, 1]} : vector<3x128xf32> to vector<1x128xf32>
    %92 = vector.broadcast %90 : vector<3x1xf32> to vector<3x128xf32>
    %93 = vector.broadcast %91 : vector<1x128xf32> to vector<3x128xf32>
    %94 = arith.mulf %92, %93 : vector<3x128xf32>
    %95 = arith.addf %89, %94 : vector<3x128xf32>
    %96 = vector.extract_strided_slice %80 {offsets = [0, 3], sizes = [3, 1], strides = [1, 1]} : vector<3x10xf32> to vector<3x1xf32>
    %97 = vector.extract_strided_slice %36 {offsets = [2, 0], sizes = [1, 128], strides = [1, 1]} : vector<3x128xf32> to vector<1x128xf32>
    %98 = vector.broadcast %96 : vector<3x1xf32> to vector<3x128xf32>
    %99 = vector.broadcast %97 : vector<1x128xf32> to vector<3x128xf32>
    %100 = arith.mulf %98, %99 : vector<3x128xf32>
    %101 = arith.addf %95, %100 : vector<3x128xf32>
    %102 = vector.extract_strided_slice %80 {offsets = [0, 4], sizes = [3, 1], strides = [1, 1]} : vector<3x10xf32> to vector<3x1xf32>
    %103 = vector.extract_strided_slice %36 {offsets = [0, 0], sizes = [1, 128], strides = [1, 1]} : vector<3x128xf32> to vector<1x128xf32>
    %104 = vector.extract_strided_slice %36 {offsets = [0, 0], sizes = [1, 128], strides = [1, 1]} : vector<3x128xf32> to vector<1x128xf32>
    %105 = arith.mulf %103, %104 : vector<1x128xf32>
    %106 = vector.broadcast %102 : vector<3x1xf32> to vector<3x128xf32>
    %107 = vector.broadcast %105 : vector<1x128xf32> to vector<3x128xf32>
    %108 = arith.mulf %106, %107 : vector<3x128xf32>
    %109 = arith.addf %101, %108 : vector<3x128xf32>
    %110 = vector.extract_strided_slice %80 {offsets = [0, 5], sizes = [3, 1], strides = [1, 1]} : vector<3x10xf32> to vector<3x1xf32>
    %111 = vector.extract_strided_slice %36 {offsets = [0, 0], sizes = [1, 128], strides = [1, 1]} : vector<3x128xf32> to vector<1x128xf32>
    %112 = vector.extract_strided_slice %36 {offsets = [1, 0], sizes = [1, 128], strides = [1, 1]} : vector<3x128xf32> to vector<1x128xf32>
    %113 = arith.mulf %111, %112 : vector<1x128xf32>
    %114 = vector.broadcast %110 : vector<3x1xf32> to vector<3x128xf32>
    %115 = vector.broadcast %113 : vector<1x128xf32> to vector<3x128xf32>
    %116 = arith.mulf %114, %115 : vector<3x128xf32>
    %117 = arith.addf %109, %116 : vector<3x128xf32>
    %118 = vector.extract_strided_slice %80 {offsets = [0, 6], sizes = [3, 1], strides = [1, 1]} : vector<3x10xf32> to vector<3x1xf32>
    %119 = vector.extract_strided_slice %36 {offsets = [0, 0], sizes = [1, 128], strides = [1, 1]} : vector<3x128xf32> to vector<1x128xf32>
    %120 = vector.extract_strided_slice %36 {offsets = [2, 0], sizes = [1, 128], strides = [1, 1]} : vector<3x128xf32> to vector<1x128xf32>
    %121 = arith.mulf %119, %120 : vector<1x128xf32>
    %122 = vector.broadcast %118 : vector<3x1xf32> to vector<3x128xf32>
    %123 = vector.broadcast %121 : vector<1x128xf32> to vector<3x128xf32>
    %124 = arith.mulf %122, %123 : vector<3x128xf32>
    %125 = arith.addf %117, %124 : vector<3x128xf32>
    %126 = vector.extract_strided_slice %80 {offsets = [0, 7], sizes = [3, 1], strides = [1, 1]} : vector<3x10xf32> to vector<3x1xf32>
    %127 = vector.extract_strided_slice %36 {offsets = [1, 0], sizes = [1, 128], strides = [1, 1]} : vector<3x128xf32> to vector<1x128xf32>
    %128 = vector.extract_strided_slice %36 {offsets = [1, 0], sizes = [1, 128], strides = [1, 1]} : vector<3x128xf32> to vector<1x128xf32>
    %129 = arith.mulf %127, %128 : vector<1x128xf32>
    %130 = vector.broadcast %126 : vector<3x1xf32> to vector<3x128xf32>
    %131 = vector.broadcast %129 : vector<1x128xf32> to vector<3x128xf32>
    %132 = arith.mulf %130, %131 : vector<3x128xf32>
    %133 = arith.addf %125, %132 : vector<3x128xf32>
    %134 = vector.extract_strided_slice %80 {offsets = [0, 8], sizes = [3, 1], strides = [1, 1]} : vector<3x10xf32> to vector<3x1xf32>
    %135 = vector.extract_strided_slice %36 {offsets = [1, 0], sizes = [1, 128], strides = [1, 1]} : vector<3x128xf32> to vector<1x128xf32>
    %136 = vector.extract_strided_slice %36 {offsets = [2, 0], sizes = [1, 128], strides = [1, 1]} : vector<3x128xf32> to vector<1x128xf32>
    %137 = arith.mulf %135, %136 : vector<1x128xf32>
    %138 = vector.broadcast %134 : vector<3x1xf32> to vector<3x128xf32>
    %139 = vector.broadcast %137 : vector<1x128xf32> to vector<3x128xf32>
    %140 = arith.mulf %138, %139 : vector<3x128xf32>
    %141 = arith.addf %133, %140 : vector<3x128xf32>
    %142 = vector.extract_strided_slice %80 {offsets = [0, 9], sizes = [3, 1], strides = [1, 1]} : vector<3x10xf32> to vector<3x1xf32>
    %143 = vector.extract_strided_slice %36 {offsets = [2, 0], sizes = [1, 128], strides = [1, 1]} : vector<3x128xf32> to vector<1x128xf32>
    %144 = vector.extract_strided_slice %36 {offsets = [2, 0], sizes = [1, 128], strides = [1, 1]} : vector<3x128xf32> to vector<1x128xf32>
    %145 = arith.mulf %143, %144 : vector<1x128xf32>
    %146 = vector.broadcast %142 : vector<3x1xf32> to vector<3x128xf32>
    %147 = vector.broadcast %145 : vector<1x128xf32> to vector<3x128xf32>
    %148 = arith.mulf %146, %147 : vector<3x128xf32>
    %149 = arith.addf %141, %148 : vector<3x128xf32>
    %c0_58 = arith.constant 0 : index
    %c0_59 = arith.constant 0 : index
    %150 = vector.load %arg8[%c0_58, %c0_59] : memref<32x3xf32, #tpu.memory_space<vmem>>, vector<32x3xf32>
    %cst_60 = arith.constant dense<0.000000e+00> : vector<32x128xf32>
    %151 = tpu.matmul %150, %149, %cst_60 {dimension_numbers = #tpu.dot_dimension_numbers<[1], [0], [0], [1], [0, 0, 1, 1], [], []>} : vector<32x3xf32>, vector<3x128xf32>, vector<32x128xf32> -> vector<32x128xf32>
    %152 = arith.mulf %59, %151 : vector<32x128xf32>
    %c0_61 = arith.constant 0 : index
    %c0_62 = arith.constant 0 : index
    %153 = vector.load %arg10[%c0_61, %c0_62] : memref<32x32xf32, #tpu.memory_space<vmem>>, vector<32x32xf32>
    %cst_63 = arith.constant dense<0.000000e+00> : vector<32x128xf32>
    %154 = tpu.matmul %153, %152, %cst_63 {dimension_numbers = #tpu.dot_dimension_numbers<[1], [0], [0], [1], [0, 0, 1, 1], [], []>} : vector<32x32xf32>, vector<32x128xf32>, vector<32x128xf32> -> vector<32x128xf32>
    %155 = arith.mulf %74, %154 : vector<32x128xf32>
    %c0_64 = arith.constant 0 : index
    %c0_65 = arith.constant 0 : index
    %156 = vector.load %arg12[%c0_64, %c0_65] : memref<16x32xf32, #tpu.memory_space<vmem>>, vector<16x32xf32>
    %cst_66 = arith.constant dense<0.000000e+00> : vector<16x128xf32>
    %157 = tpu.matmul %156, %155, %cst_66 {dimension_numbers = #tpu.dot_dimension_numbers<[1], [0], [0], [1], [0, 0, 1, 1], [], []>} : vector<16x32xf32>, vector<32x128xf32>, vector<16x128xf32> -> vector<16x128xf32>
    %158 = arith.subf %79, %0 : vector<16x128xf32>
    %159 = arith.subf %157, %1 : vector<16x128xf32>
    %160 = arith.subf %149, %44 : vector<3x128xf32>
    %161 = arith.mulf %158, %158 : vector<16x128xf32>
    %cst_67 = arith.constant dense<0.000000e+00> : vector<128xf32>
    %162 = vector.multi_reduction <add>, %161, %cst_67 [0] : vector<16x128xf32> to vector<128xf32>
    %163 = vector.shape_cast %162 : vector<128xf32> to vector<1x128xf32>
    %164 = arith.mulf %159, %159 : vector<16x128xf32>
    %cst_68 = arith.constant dense<0.000000e+00> : vector<128xf32>
    %165 = vector.multi_reduction <add>, %164, %cst_68 [0] : vector<16x128xf32> to vector<128xf32>
    %166 = vector.shape_cast %165 : vector<128xf32> to vector<1x128xf32>
    %167 = arith.mulf %160, %160 : vector<3x128xf32>
    %cst_69 = arith.constant dense<0.000000e+00> : vector<128xf32>
    %168 = vector.multi_reduction <add>, %167, %cst_69 [0] : vector<3x128xf32> to vector<128xf32>
    %169 = vector.shape_cast %168 : vector<128xf32> to vector<1x128xf32>
    %170 = tpu.concatenate %163, %166, %169 in 0 : vector<1x128xf32>, vector<1x128xf32>, vector<1x128xf32> -> vector<3x128xf32>
    %c0_70 = arith.constant 0 : index
    %c0_71 = arith.constant 0 : index
    %171 = vector.load %arg15[%c0_70, %c0_71] : memref<3x128xf32, #tpu.memory_space<vmem>>, vector<3x128xf32>
    tpu.vector_store %arg15[%c0_70, %c0_71], %170 {strides = array<i32>} : memref<3x128xf32, #tpu.memory_space<vmem>>, vector<3x128xf32>,
    return
  }
  func.func @transform_0(%arg0: i32) -> (i32, i32) {
    %c0_i32 = arith.constant 0 : i32
    %c0_i32_0 = arith.constant 0 : i32
    return %c0_i32, %arg0 : i32, i32
  }
  func.func @transform_1(%arg0: i32) -> (i32, i32) {
    %c0_i32 = arith.constant 0 : i32
    %c0_i32_0 = arith.constant 0 : i32
    %c0_i32_1 = arith.constant 0 : i32
    return %c0_i32, %c0_i32_0 : i32, i32
  }
  func.func @transform_2(%arg0: i32) -> (i32, i32) {
    %c0_i32 = arith.constant 0 : i32
    %c0_i32_0 = arith.constant 0 : i32
    %c0_i32_1 = arith.constant 0 : i32
    return %c0_i32, %c0_i32_0 : i32, i32
  }
  func.func @transform_3(%arg0: i32) -> (i32, i32) {
    %c0_i32 = arith.constant 0 : i32
    %c0_i32_0 = arith.constant 0 : i32
    %c0_i32_1 = arith.constant 0 : i32
    return %c0_i32, %c0_i32_0 : i32, i32
  }
  func.func @transform_4(%arg0: i32) -> (i32, i32) {
    %c0_i32 = arith.constant 0 : i32
    %c0_i32_0 = arith.constant 0 : i32
    %c0_i32_1 = arith.constant 0 : i32
    return %c0_i32, %c0_i32_0 : i32, i32
  }
  func.func @transform_5(%arg0: i32) -> (i32, i32) {
    %c0_i32 = arith.constant 0 : i32
    %c0_i32_0 = arith.constant 0 : i32
    %c0_i32_1 = arith.constant 0 : i32
    return %c0_i32, %c0_i32_0 : i32, i32
  }
  func.func @transform_6(%arg0: i32) -> (i32, i32) {
    %c0_i32 = arith.constant 0 : i32
    %c0_i32_0 = arith.constant 0 : i32
    %c0_i32_1 = arith.constant 0 : i32
    return %c0_i32, %c0_i32_0 : i32, i32
  }
  func.func @transform_7(%arg0: i32) -> (i32, i32) {
    %c0_i32 = arith.constant 0 : i32
    %c0_i32_0 = arith.constant 0 : i32
    %c0_i32_1 = arith.constant 0 : i32
    return %c0_i32, %c0_i32_0 : i32, i32
  }
  func.func @transform_8(%arg0: i32) -> (i32, i32) {
    %c0_i32 = arith.constant 0 : i32
    %c0_i32_0 = arith.constant 0 : i32
    %c0_i32_1 = arith.constant 0 : i32
    return %c0_i32, %c0_i32_0 : i32, i32
  }
  func.func @transform_9(%arg0: i32) -> (i32, i32) {
    %c0_i32 = arith.constant 0 : i32
    %c0_i32_0 = arith.constant 0 : i32
    %c0_i32_1 = arith.constant 0 : i32
    return %c0_i32, %c0_i32_0 : i32, i32
  }
  func.func @transform_10(%arg0: i32) -> (i32, i32) {
    %c0_i32 = arith.constant 0 : i32
    %c0_i32_0 = arith.constant 0 : i32
    %c0_i32_1 = arith.constant 0 : i32
    return %c0_i32, %c0_i32_0 : i32, i32
  }
  func.func @transform_11(%arg0: i32) -> (i32, i32) {
    %c0_i32 = arith.constant 0 : i32
    %c0_i32_0 = arith.constant 0 : i32
    %c0_i32_1 = arith.constant 0 : i32
    return %c0_i32, %c0_i32_0 : i32, i32
  }
  func.func @transform_12(%arg0: i32) -> (i32, i32) {
    %c0_i32 = arith.constant 0 : i32
    %c0_i32_0 = arith.constant 0 : i32
    %c0_i32_1 = arith.constant 0 : i32
    return %c0_i32, %c0_i32_0 : i32, i32
  }
  func.func @transform_13(%arg0: i32) -> (i32, i32) {
    %c0_i32 = arith.constant 0 : i32
    %c0_i32_0 = arith.constant 0 : i32
    %c0_i32_1 = arith.constant 0 : i32
    return %c0_i32, %c0_i32_0 : i32, i32
  }
  func.func @transform_14(%arg0: i32) -> (i32, i32) {
    %c0_i32 = arith.constant 0 : i32
    %c0_i32_0 = arith.constant 0 : i32
    return %c0_i32, %arg0 : i32, i32
  }
}

</mosaic_0001>

<bundles_post_ra>
// kernel: tpu_custom_call.1
= control target key start
LH: loop header
LB: loop body
LE: loop exit
PB: predicated region body
PF: predicated region fallthrough
CT: control target
= control target key end

     0   :  { %vm80_vm0 = vcmask 130048   ;;  %v1818_v4 = vmov 0   ;;  %s2305_s0 = inlined_call_operand.vmem [shape: f32[32,128], index: 0, kind: input, shape index: {}]   ;;  %s2306_s1 = inlined_call_operand.vmem [shape: f32[32,16], index: 1, kind: input, shape index: {}]   ;;  %s2307_s2 = inlined_call_operand.vmem [shape: f32[32,1], index: 2, kind: input, shape index: {}]   ;;  %s2308_s3 = inlined_call_operand.vmem [shape: f32[32,32], index: 3, kind: input, shape index: {}]   ;;  %s2309_s4 = inlined_call_operand.vmem [shape: f32[32,1], index: 4, kind: input, shape index: {}]   ;;  %s2310_s5 = inlined_call_operand.vmem [shape: f32[3,32], index: 5, kind: input, shape index: {}]   ;;  %s2311_s6 = inlined_call_operand.vmem [shape: f32[3,1], index: 6, kind: input, shape index: {}]   ;;  %s2312_s7 = inlined_call_operand.vmem [shape: f32[32,3], index: 7, kind: input, shape index: {}]   ;;  %s2313_s8 = inlined_call_operand.vmem [shape: f32[32,1], index: 8, kind: input, shape index: {}]   ;;  %s2314_s9 = inlined_call_operand.vmem [shape: f32[32,32], index: 9, kind: input, shape index: {}]   ;;  %s2315_s10 = inlined_call_operand.vmem [shape: f32[32,1], index: 10, kind: input, shape index: {}]   ;;  %s2316_s11 = inlined_call_operand.vmem [shape: f32[16,32], index: 11, kind: input, shape index: {}]   ;;  %s2317_s12 = inlined_call_operand.vmem [shape: f32[16,1], index: 12, kind: input, shape index: {}]   ;;  %s2318_s13 = inlined_call_operand.vmem [shape: f32[3,10], index: 13, kind: input, shape index: {}]   ;;  %s2319_s14 = inlined_call_operand.hbm [shape: f32[3,128], index: 14, kind: output, shape index: {}]  }
   0x1   :  { %v1909_v0 = vld [vmem:[%s2305_s0 + $0x8] sm:$0xff]  ;;  %v1914_v1 = vld [vmem:[%s2305_s0] sm:$0xff]  ;;  %1752 = vset.pattern.permute.xlu0 %v1818_v4  ;;  %v59_v5 = vld [vmem:[%s2307_s2 + $0x18] sm:$0xff]  ;;  %1753 = vset.pattern.permute.xlu1 %v1818_v4 }
   0x2   :  { %v1919_v2 = vld [vmem:[%s2306_s1] sm:$0xff]  ;;  %1603 = vmatprep.subr.mxu0 %v1909_v0  ;;  %v1928_v3 = vld [vmem:[%s2306_s1 + $0x8] sm:$0xff]  ;;  %v1938_v6 = vld [vmem:[%s2306_s1 + $0x10] sm:$0xff]  ;;  %77 = vperm.xlu0 %1752, %v59_v5  }
   0x3   :  { %1607 = vmatprep.mubr.msk.f32.mxu0 %vm80_vm0, %v1919_v2  ;;  %1604 = vmatpush3.msra.mxu0 %v1909_v0  ;;  %v57_v7 = vld [vmem:[%s2307_s2 + $0x8] sm:$0xff]  ;;  %v58_v8 = vld [vmem:[%s2307_s2 + $0x10] sm:$0xff]  ;;  %v1955_v9 = vld [vmem:[%s2306_s1 + $0x18] sm:$0xff] }
   0x4   :  { %1605 = vmatprep.subr.mxu0 %v1914_v1  ;;  %67 = vperm.xlu1 %1753, %v57_v7   ;;  %v56_v10 = vld [vmem:[%s2307_s2] sm:$0xff]  ;;  %v209_v11 = vld [vmem:[%s2309_s4 + $0x18] sm:$0xff] }
   0x5   :  { %1606 = vmatpush3.msra.mxu0 %v1914_v1 }
   0x6   :  { %1608 = vmatmul.mubr.msk.f32.vlgmr.msra.gmra.mxu0 %vm80_vm0, %v1928_v3  ;;  %72 = vperm.xlu0 %1752, %v58_v8  }
   0x7   :  { %1610 = vmatprep.mubr.msk.f32.mxu0 %vm80_vm0, %v1938_v6 }
   0x8   :  { %19 = vsyncpa [#allocation3], 0  ;;  %62 = vperm.xlu1 %1753, %v56_v10   ;;  %v208_v12 = vld [vmem:[%s2309_s4 + $0x10] sm:$0xff]  ;;  %v207_v13 = vld [vmem:[%s2309_s4 + $0x8] sm:$0xff]  ;;  %vm230_vm1 = vcmask 261120   ;;  %v1819_v57 = vmov 0.0  }
   0x9   :  { %v206_v14 = vld [vmem:[%s2309_s4] sm:$0xff]  ;;  %v687_v16 = vld [vmem:[%s2313_s8 + $0x18] sm:$0xff]  ;;  %v686_v17 = vld [vmem:[%s2313_s8 + $0x10] sm:$0xff]  ;;  %1627 = vmatprep.subr.mxu0 %v1819_v57  ;;  %vm1820_vm2 = vmmov 0   ;;  %v1821_v58 = vmov 1   ;;  %v1822_v59 = vmov 3  }
   0xa   :  { %1611 = vmatmul.mubr.msk.f32.gmra.mxu0 %vm80_vm0, %v1955_v9  ;;  %227 = vperm.xlu0 %1752, %v209_v11   ;;  %v353_v15 = vld [vmem:[%s2311_s6] sm:$0x7]  ;;  %v685_v18 = vld [vmem:[%s2313_s8 + $0x8] sm:$0xff]  ;;  %v841_v20 = vld [vmem:[%s2315_s10 + $0x18] sm:$0xff]  ;;  %v1823_v60 = vmov 2   ;;  %v1824_v61 = vmov 6  }
   0xb   :  { %v684_v19 = vld [vmem:[%s2313_s8] sm:$0xff]  ;;  %v840_v21 = vld [vmem:[%s2315_s10 + $0x10] sm:$0xff]  ;;  %v839_v22 = vld [vmem:[%s2315_s10 + $0x8] sm:$0xff]  ;;  %1635 = vmatprep.mubr.msk.f32.mxu0 %vm1820_vm2, %v1819_v57  ;;  %v1825_v62 = vmov 4   ;;  %v1826_v63 = vmov 9   ;;  %v1827_v5 = vmov 5  }
   0xc   :  { %222 = vperm.xlu1 %1753, %v208_v12   ;;  %v838_v23 = vld [vmem:[%s2315_s10] sm:$0xff]  ;;  %v2028_v54 = vld [vmem:[%s2308_s3 + $0x8] sm:$0xff]  ;;  %v2034_v55 = vld [vmem:[%s2308_s3 + $0x10] sm:$0xff]  ;;  %v1828_v7 = vmov 7   ;;  %v1829_v8 = vmov 8   ;;  %vm721_vm3 = vcmask 1042432  }
   0xd   :  { %v2004_v24 = vld [vmem:[%s2318_s13] sm:$0x7]  ;;  %v2044_v56 = vld [vmem:[%s2308_s3 + $0x18] sm:$0xff]  ;;  %vm708_vm4 = vcmask 23552   ;;  %vm1468_vm5 = vcmask 1040384   ;;  %vm1470_vm6 = vcmask 1041408  }
   0xe   :  { %217 = vperm.xlu0 %1752, %v207_v13   ;;  %v202_v25 = vld [vmem:[%s2308_s3] sm:$0xff] }
   0xf   :  { %1621 = vmatprep.mubr.msk.f32.mxu1 %vm230_vm1, %v202_v25 }
  0x10   :  { %212 = vperm.xlu1 %1753, %v206_v14  }
  0x12   :  { %356 = vperm.xlu0 %1752, %v353_v15  }
  0x14   :  { %705 = vperm.xlu1 %1753, %v687_v16  }
  0x16   :  { %700 = vperm.xlu0 %1752, %v686_v17  }
  0x18   :  { %695 = vperm.xlu1 %1753, %v685_v18  }
  0x1a   :  { %690 = vperm.xlu0 %1752, %v684_v19  }
  0x1c   :  { %859 = vperm.xlu1 %1753, %v841_v20  }
  0x1e   :  { %854 = vperm.xlu0 %1752, %v840_v21  }
  0x20   :  { %849 = vperm.xlu1 %1753, %v839_v22  }
  0x22   :  { %844 = vperm.xlu0 %1752, %v838_v23  }
  0x24   :  { %1754 = vset.pattern.permute.xlu1 %v1821_v58 }
  0x25   :  { %1085 = vperm.xlu1 %1754, %v2004_v24  }
  0x26   :  { %1081 = vperm.xlu0 %1752, %v2004_v24  }
  0x29   :  { %1755 = vset.pattern.permute.xlu1 %v1823_v60 }
  0x2a   :  { %1756 = vset.pattern.permute.xlu0 %v1822_v59  ;;  %1095 = vperm.xlu1 %1755, %v2004_v24  }
  0x2b   :  { %1105 = vperm.xlu0 %1756, %v2004_v24  }
  0x2e   :  { %1757 = vset.pattern.permute.xlu1 %v1825_v62 }
  0x2f   :  { %1759 = vset.pattern.permute.xlu0 %v1824_v61  ;;  %1116 = vperm.xlu1 %1757, %v2004_v24  }
  0x30   :  { %1142 = vperm.xlu0 %1759, %v2004_v24  }
  0x33   :  { %1758 = vset.pattern.permute.xlu1 %v1827_v5 }
  0x34   :  { %1762 = vset.pattern.permute.xlu0 %v1826_v63  ;;  %1129 = vperm.xlu1 %1758, %v2004_v24  }
  0x35   :  { %1172 = vperm.xlu0 %1762, %v2004_v24  }
  0x38   :  { %1760 = vset.pattern.permute.xlu1 %v1828_v7 }
  0x39   :  { %1152 = vperm.xlu1 %1760, %v2004_v24  }
  0x3d   :  { %1761 = vset.pattern.permute.xlu1 %v1829_v8 }
  0x3e   :  { %1162 = vperm.xlu1 %1761, %v2004_v24  }
  0x42   :  { %1763 = vset.pattern.permute.xlu1 %v1818_v4 }
  0x7d   :  { %v78_v27 = vpop.permute.xlu0 %77 }
  0x7f   :  { %v68_v26 = vpop.permute.xlu1 %67 }
  0x81   :  { %v73_v36 = vpop.permute.xlu0 %72 }
  0x83   :  { %v63_v30 = vpop.permute.xlu1 %62 }
  0x85   :  { %v228_v10 = vpop.permute.xlu0 %227 }
  0x87   :  { %v223_v11 = vpop.permute.xlu1 %222 }
  0x89   :  { %v218_v12 = vpop.permute.xlu0 %217 }
  0x8b   :  { %v213_v15 = vpop.permute.xlu1 %212 }
  0x8f   :  { %v706_v5 = vpop.permute.xlu1 %705 }
  0xc6   :  { %v1609_v28 = vpop.f32.mrf.mxu0 }
  0xc7   :  { %v165_v29 = vadd.f32 %v1609_v28, %v68_v26 }
  0xc8   :  { %v159_v31 = vpop.f32.mrf.mxu0 }
  0xc9   :  { %v160_v32 = vadd.f32 %v159_v31, %v63_v30  ;;  %v179_v33 = vmul.f32 0.5, %v165_v29 }
  0xca   :  { %v1612_v34 = vpop.f32.mrf.mxu0 }
  0xcb   :  { %v175_v35 = vadd.f32 %v1612_v34, %v78_v27  ;;  %v178_v37 = vmul.f32 0.5, %v160_v32  ;;  %1764 = vtanh.f32 %v179_v33 }
  0xcc   :  { %v169_v38 = vpop.f32.mrf.mxu0 }
  0xcd   :  { %v181_v39 = vmul.f32 0.5, %v175_v35  ;;  %v170_v40 = vadd.f32 %v169_v38, %v73_v36  ;;  %v2083_v38 = vld [vmem:[%s2305_s0 + $0x18] sm:$0xff] }
  0xcf   :  { %1766 = vtanh.f32 %v181_v39  ;;  %v180_v41 = vmul.f32 0.5, %v170_v40  ;;  %v2090_v39 = vld [vmem:[%s2305_s0 + $0x10] sm:$0xff] }
  0xd0   :  { %1768 = vtanh.f32 %v178_v37  ;;  %v2078_v37 = vld [vmem:[%s2310_s5] sm:$0x7] }
  0xd1   :  { %1770 = vtanh.f32 %v180_v41 }
  0xd8   :  { %v1765_v42 = vpop.eup %1764 }
  0xd9   :  { %v187_v47 = vmul.f32 0.5, %v1765_v42 }
  0xdb   :  { %v2017_v52 = vadd.f32 0.5, %v187_v47 }
  0xdc   :  { %v1767_v43 = vpop.eup %1766 }
  0xdd   :  { %v1769_v44 = vpop.eup %1768  ;;  %v189_v45 = vmul.f32 0.5, %v1767_v43 }
  0xde   :  { %v1771_v46 = vpop.eup %1770  ;;  %v186_v50 = vmul.f32 0.5, %v1769_v44 }
  0xdf   :  { %v2011_v48 = vadd.f32 0.5, %v189_v45  ;;  %v188_v49 = vmul.f32 0.5, %v1771_v46 }
  0xe0   :  { %v2021_v53 = vadd.f32 0.5, %v186_v50 }
  0xe1   :  { %v2013_v51 = vadd.f32 0.5, %v188_v49  ;;  %1613 = vmatprep.subr.mxu1 %v2011_v48  ;;  %v197_v41 = vsub.f32 1.0, %v2011_v48 }
  0xe2   :  { %1614 = vmatpush3.msra.mxu1 %v2011_v48 }
  0xe3   :  { %1615 = vmatprep.subr.mxu1 %v2013_v51  ;;  %v196_v43 = vsub.f32 1.0, %v2013_v51  ;;  %v201_v45 = vmul.f32 %v197_v41, %v2011_v48  ;;  %v357_v48 = vpop.permute.xlu0 %356 }
  0xe4   :  { %1616 = vmatpush3.msra.mxu1 %v2013_v51 }
  0xe5   :  { %1617 = vmatprep.subr.mxu1 %v2017_v52 }
  0xe6   :  { %1618 = vmatpush3.msra.mxu1 %v2017_v52 }
  0xe7   :  { %1619 = vmatprep.subr.mxu1 %v2021_v53 }
  0xe8   :  { %1620 = vmatpush3.msra.mxu1 %v2021_v53 }
  0xe9   :  { %1622 = vmatmul.mubr.msk.f32.vlgmr.msra.gmra.mxu1 %vm230_vm1, %v2028_v54 }
  0xea   :  { %1624 = vmatprep.mubr.msk.f32.mxu1 %vm230_vm1, %v2034_v55 }
  0xed   :  { %1625 = vmatmul.mubr.msk.f32.gmra.mxu1 %vm230_vm1, %v2044_v56 }
  0xee   :  { %1656 = vmatprep.mubr.msk.f32.mxu1 %vm230_vm1, %v202_v25 }
 0x1a9   :  { %v1623_v13 = vpop.f32.mrf.mxu1 }
 0x1aa   :  { %v315_v14 = vadd.f32 %v1623_v13, %v218_v12 }
 0x1ab   :  { %v309_v16 = vpop.f32.mrf.mxu1 }
 0x1ac   :  { %v310_v17 = vadd.f32 %v309_v16, %v213_v15  ;;  %v329_v18 = vmul.f32 0.5, %v315_v14 }
 0x1ad   :  { %v1626_v19 = vpop.f32.mrf.mxu1 }
 0x1ae   :  { %v325_v20 = vadd.f32 %v1626_v19, %v228_v10  ;;  %v328_v21 = vmul.f32 0.5, %v310_v17  ;;  %1772 = vtanh.f32 %v329_v18  ;;  %v696_v19 = vpop.permute.xlu1 %695 }
 0x1af   :  { %v319_v22 = vpop.f32.mrf.mxu1 }
 0x1b0   :  { %v331_v23 = vmul.f32 0.5, %v325_v20  ;;  %v320_v25 = vadd.f32 %v319_v22, %v223_v11  ;;  %v701_v11 = vpop.permute.xlu0 %700 }
 0x1b2   :  { %1774 = vtanh.f32 %v331_v23  ;;  %v330_v24 = vmul.f32 0.5, %v320_v25 }
 0x1b3   :  { %1776 = vtanh.f32 %v328_v21 }
 0x1b4   :  { %1778 = vtanh.f32 %v330_v24  ;;  %v691_v25 = vpop.permute.xlu0 %690 }
 0x1bb   :  { %v1773_v4 = vpop.eup %1772 }
 0x1bc   :  { %v337_v30 = vmul.f32 0.5, %v1773_v4 }
 0x1be   :  { %v2068_v35 = vadd.f32 0.5, %v337_v30 }
 0x1bf   :  { %v1775_v26 = vpop.eup %1774 }
 0x1c0   :  { %v1777_v27 = vpop.eup %1776  ;;  %v339_v28 = vmul.f32 0.5, %v1775_v26  ;;  %v345_v8 = vsub.f32 1.0, %v2068_v35 }
 0x1c1   :  { %v1779_v29 = vpop.eup %1778  ;;  %v336_v33 = vmul.f32 0.5, %v1777_v27 }
 0x1c2   :  { %v2062_v31 = vadd.f32 0.5, %v339_v28  ;;  %v338_v32 = vmul.f32 0.5, %v1779_v29  ;;  %v349_v17 = vmul.f32 %v345_v8, %v2068_v35  ;;  %v834_v29 = vld [vmem:[%s2314_s9] sm:$0xff] }
 0x1c3   :  { %v2072_v36 = vadd.f32 0.5, %v336_v33 }
 0x1c4   :  { %v2064_v34 = vadd.f32 0.5, %v338_v32  ;;  %1628 = vmatpush3.msra.mxu0 %v2062_v31 }
 0x1c5   :  { %1629 = vmatprep.subr.mxu0 %v1819_v57  ;;  %v344_v13 = vsub.f32 1.0, %v2072_v36 }
 0x1c6   :  { %1630 = vmatpush3.msra.mxu0 %v2064_v34  ;;  %v346_v63 = vsub.f32 1.0, %v2064_v34 }
 0x1c7   :  { %1631 = vmatprep.subr.mxu0 %v1819_v57  ;;  %v348_v22 = vmul.f32 %v344_v13, %v2072_v36 }
 0x1c8   :  { %1632 = vmatpush3.msra.mxu0 %v2068_v35  ;;  %v350_v15 = vmul.f32 %v346_v63, %v2064_v34 }
 0x1c9   :  { %1633 = vmatprep.subr.mxu0 %v1819_v57 }
 0x1ca   :  { %1634 = vmatpush3.msra.mxu0 %v2072_v36 }
 0x1cb   :  { %1636 = vmatmul.mubr.msk.f32.vlgmr.msra.gmra.mxu0 %vm230_vm1, %v2078_v37  ;;  %1638 = vmatprep.subr.mxu0 %v2083_v38 }
 0x1cc   :  { %1639 = vmatpush3.msra.mxu0 %v2083_v38  ;;  %1642 = vmatprep.mubr.msk.f32.mxu0 %vm80_vm0, %v1919_v2 }
 0x1cd   :  { %1640 = vmatprep.subr.mxu0 %v2090_v39 }
 0x1ce   :  { %1641 = vmatpush3.msra.mxu0 %v2090_v39 }
 0x1cf   :  { %1643 = vmatmul.mubr.msk.f32.vlgmr.msra.gmra.mxu0 %vm80_vm0, %v1928_v3  ;;  %1662 = vmatprep.subr.mxu0 %v1819_v57  ;;  %v195_v3 = vsub.f32 1.0, %v2017_v52 }
 0x1d0   :  { %1645 = vmatprep.mubr.msk.f32.mxu0 %vm80_vm0, %v1938_v6  ;;  %v194_v6 = vsub.f32 1.0, %v2021_v53 }
 0x1d1   :  { %v199_v50 = vmul.f32 %v195_v3, %v2017_v52  ;;  %v2139_v52 = vld [vmem:[%s2312_s7 + $0x8] sm:$0xff] }
 0x1d2   :  { %v198_v60 = vmul.f32 %v194_v6, %v2021_v53  ;;  %v2144_v53 = vld [vmem:[%s2312_s7 + $0x10] sm:$0xff]  ;;  %v2191_v6 = vld [vmem:[%s2314_s9 + $0x8] sm:$0xff] }
 0x1d3   :  { %1646 = vmatmul.mubr.msk.f32.gmra.mxu0 %vm80_vm0, %v1955_v9  ;;  %v200_v9 = vmul.f32 %v196_v43, %v2013_v51  ;;  %v2130_v51 = vld [vmem:[%s2312_s7] sm:$0xff] }
 0x1d4   :  { %1670 = vmatprep.mubr.msk.f32.mxu0 %vm1820_vm2, %v1819_v57 }
 0x28b   :  { %v428_v40 = vpop.f32.mrf.mxu0 }
 0x28c   :  { %v2117_v62 = vadd.f32 %v428_v40, %v357_v48  ;;  %v855_v48 = vpop.permute.xlu0 %854 }
 0x28d   :  { %v1637_v2 = vpop.f32.mrf.mxu0 }
 0x28f   :  { %v1644_v42 = vpop.f32.mrf.mxu0 }
 0x290   :  { %v518_v59 = vmul.f32 %v1644_v42, %v199_v50  ;;  %v985_v50 = vld [vmem:[%s2317_s12] sm:$0xff] }
 0x291   :  { %v498_v44 = vpop.f32.mrf.mxu0  ;;  %989 = vperm.xlu1 %1763, %v985_v50  }
 0x292   :  { %v517_v61 = vmul.f32 %v498_v44, %v198_v60  ;;  %v860_v60 = vpop.permute.xlu1 %859 }
 0x293   :  { %v1647_v46 = vpop.f32.mrf.mxu0 }
 0x294   :  { %v520_v47 = vmul.f32 %v1647_v46, %v201_v45 }
 0x295   :  { %v508_v49 = vpop.f32.mrf.mxu0 }
 0x296   :  { %v519_v58 = vmul.f32 %v508_v49, %v200_v9  ;;  %1648 = vmatprep.subr.mxu1 %v520_v47  ;;  %v2207_v9 = vld [vmem:[%s2314_s9 + $0x18] sm:$0xff]  ;;  %v2215_v49 = vld [vmem:[%s2316_s11] sm:$0xff] }
 0x297   :  { %1649 = vmatpush3.msra.mxu1 %v520_v47  ;;  %v2197_v47 = vld [vmem:[%s2314_s9 + $0x10] sm:$0xff] }
 0x298   :  { %1650 = vmatprep.subr.mxu1 %v519_v58 }
 0x299   :  { %1651 = vmatpush3.msra.mxu1 %v519_v58  ;;  %v986_v58 = vld [vmem:[%s2317_s12 + $0x8] sm:$0xff] }
 0x29a   :  { %1652 = vmatprep.subr.mxu1 %v518_v59  ;;  %994 = vperm.xlu1 %1763, %v986_v58  }
 0x29b   :  { %1653 = vmatpush3.msra.mxu1 %v518_v59  ;;  %v1088_v59 = vlaneseq }
 0x29c   :  { %1654 = vmatprep.subr.mxu1 %v517_v61 }
 0x29d   :  { %1655 = vmatpush3.msra.mxu1 %v517_v61  ;;  %v1089_v61 = vshrl.u32 %v1088_v59, 7 }
 0x29e   :  { %1657 = vmatmul.mubr.msk.f32.vlgmr.msra.gmra.mxu1 %vm230_vm1, %v2028_v54  ;;  %1673 = vmatprep.subr.msk.mxu1 %vm721_vm3, %v2117_v62  ;;  %v2153_v54 = vld [vmem:[%s2312_s7 + $0x18] sm:$0xff] }
 0x29f   :  { %1674 = vmatpush3.msk.msra.mxu1 %vm721_vm3, %v2117_v62  ;;  %1659 = vmatprep.mubr.msk.f32.mxu1 %vm230_vm1, %v2034_v55  ;;  %v347_v55 = vsub.f32 1.0, %v2062_v31  ;;  %v1100_v8 = vsub.s32 1, %v1089_v61 }
 0x2a1   :  { %v351_v10 = vmul.f32 %v347_v55, %v2062_v31  ;;  %v1090_v55 = vsub.s32 0, %v1089_v61 }
 0x2a2   :  { %1660 = vmatmul.mubr.msk.f32.gmra.mxu1 %vm230_vm1, %v2044_v56 }
 0x2a3   :  { %1675 = vmatprep.mubr.msk.f32.mxu1 %vm708_vm4, %v2130_v51  ;;  %v1091_v63 = vrot.slane %v2117_v62, %v1090_v55 }
 0x2a6   :  { %1676 = vmatmul.mubr.msk.f32.vlgmr.msra.gmra.mxu1 %vm708_vm4, %v2139_v52 }
 0x2a7   :  { %1678 = vmatprep.mubr.msk.f32.mxu1 %vm708_vm4, %v2144_v53 }
 0x2aa   :  { %1679 = vmatmul.mubr.msk.f32.gmra.mxu1 %vm708_vm4, %v2153_v54 }
 0x2ab   :  { %1703 = vmatprep.mubr.msk.f32.mxu1 %vm230_vm1, %v2215_v49 }
 0x35e   :  { %v1658_v56 = vpop.f32.mrf.mxu1 }
 0x35f   :  { %v607_v21 = vmul.f32 %v1658_v56, %v349_v17  ;;  %v850_v56 = vpop.permute.xlu1 %849 }
 0x360   :  { %v587_v7 = vpop.f32.mrf.mxu1 }
 0x361   :  { %v606_v4 = vmul.f32 %v587_v7, %v348_v22 }
 0x362   :  { %v1661_v12 = vpop.f32.mrf.mxu1 }
 0x363   :  { %v609_v14 = vmul.f32 %v1661_v12, %v351_v10  ;;  %v1086_v7 = vpop.permute.xlu1 %1085  ;;  %v1101_v12 = vrot.slane %v2117_v62, %v1100_v8 }
 0x364   :  { %v597_v16 = vpop.f32.mrf.mxu1  ;;  %v1092_v10 = vmul.f32 %v1091_v63, %v1086_v7 }
 0x365   :  { %v608_v18 = vmul.f32 %v597_v16, %v350_v15  ;;  %1663 = vmatpush3.msra.mxu0 %v609_v14 }
 0x366   :  { %1664 = vmatprep.subr.mxu0 %v1819_v57  ;;  %v1677_v20 = vpop.f32.mrf.mxu1 }
 0x367   :  { %v797_v23 = vadd.f32 %v1677_v20, %v696_v19  ;;  %1665 = vmatpush3.msra.mxu0 %v608_v18  ;;  %v1096_v14 = vpop.permute.xlu1 %1095  ;;  %v1114_v18 = vmul.f32 %v2117_v62, %v2117_v62  ;;  %v1125_v19 = vrot.slane %v2117_v62, 1 }
 0x368   :  { %1666 = vmatprep.subr.mxu0 %v1819_v57  ;;  %v791_v24 = vpop.f32.mrf.mxu1  ;;  %v1102_v16 = vmul.f32 %v1101_v12, %v1096_v14 }
 0x369   :  { %v792_v26 = vadd.f32 %v791_v24, %v691_v25  ;;  %1667 = vmatpush3.msra.mxu0 %v607_v21  ;;  %v811_v27 = vmul.f32 0.5, %v797_v23  ;;  %v1122_v25 = vrot.slane %v1114_v18, %v1090_v55  ;;  %v1127_v24 = vmul.f32 %v1125_v19, %v2117_v62 }
 0x36a   :  { %1668 = vmatprep.subr.mxu0 %v1819_v57  ;;  %v1680_v28 = vpop.f32.mrf.mxu1 }
 0x36b   :  { %v807_v30 = vadd.f32 %v1680_v28, %v706_v5  ;;  %1669 = vmatpush3.msra.mxu0 %v606_v4  ;;  %v810_v31 = vmul.f32 0.5, %v792_v26  ;;  %1780 = vtanh.f32 %v811_v27  ;;  %v845_v5 = vpop.permute.xlu0 %844  ;;  %v1117_v21 = vpop.permute.xlu1 %1116  ;;  %v1138_v4 = vrot.slane %v2117_v62, 2 }
 0x36c   :  { %1671 = vmatmul.mubr.msk.f32.vlgmr.msra.gmra.mxu0 %vm230_vm1, %v2078_v37  ;;  %v801_v32 = vpop.f32.mrf.mxu1  ;;  %v1123_v27 = vmul.f32 %v1122_v25, %v1117_v21  ;;  %v1135_v28 = vrot.slane %v1127_v24, %v1090_v55 }
 0x36d   :  { %v813_v33 = vmul.f32 0.5, %v807_v30  ;;  %v802_v34 = vadd.f32 %v801_v32, %v701_v11  ;;  %1689 = vmatprep.mubr.msk.f32.mxu0 %vm230_vm1, %v834_v29  ;;  %v1110_v11 = vsub.s32 2, %v1089_v61 }
 0x36f   :  { %1782 = vtanh.f32 %v813_v33  ;;  %v812_v35 = vmul.f32 0.5, %v802_v34  ;;  %v1082_v13 = vpop.permute.xlu0 %1081  ;;  %v1111_v17 = vrot.slane %v2117_v62, %v1110_v11  ;;  %v1130_v30 = vpop.permute.xlu1 %1129  ;;  %v1178_v50 = vrot.slane %v1114_v18, %v1110_v11 }
 0x370   :  { %1784 = vtanh.f32 %v810_v31  ;;  %v1093_v15 = vadd.f32 %v1092_v10, %v1082_v13  ;;  %v1136_v32 = vmul.f32 %v1135_v28, %v1130_v30 }
 0x371   :  { %1786 = vtanh.f32 %v812_v35 }
 0x372   :  { %v1103_v20 = vadd.f32 %v1102_v16, %v1093_v15 }
 0x373   :  { %v1106_v22 = vpop.permute.xlu0 %1105 }
 0x374   :  { %v1112_v23 = vmul.f32 %v1111_v17, %v1106_v22 }
 0x376   :  { %v1113_v26 = vadd.f32 %v1112_v23, %v1103_v20 }
 0x377   :  { %v1143_v35 = vpop.permute.xlu0 %1142 }
 0x378   :  { %v1781_v57 = vpop.eup %1780  ;;  %v1124_v31 = vadd.f32 %v1123_v27, %v1113_v26 }
 0x379   :  { %v819_v42 = vmul.f32 0.5, %v1781_v57  ;;  %v1153_v57 = vpop.permute.xlu1 %1152 }
 0x37a   :  { %v1137_v34 = vadd.f32 %v1136_v32, %v1124_v31 }
 0x37b   :  { %v2180_v45 = vadd.f32 0.5, %v819_v42  ;;  %v1168_v42 = vrot.slane %v1127_v24, %v1100_v8  ;;  %v1173_v59 = vpop.permute.xlu0 %1172 }
 0x37c   :  { %v1783_v36 = vpop.eup %1782  ;;  %v1179_v63 = vmul.f32 %v1178_v50, %v1173_v59 }
 0x37d   :  { %v1785_v40 = vpop.eup %1784  ;;  %v821_v2 = vmul.f32 0.5, %v1783_v36 }
 0x37e   :  { %v1787_v41 = vpop.eup %1786  ;;  %v818_v37 = vmul.f32 0.5, %v1785_v40  ;;  %v1158_v40 = vrot.slane %v1114_v18, %v1100_v8 }
 0x37f   :  { %v2174_v43 = vadd.f32 0.5, %v821_v2  ;;  %v820_v44 = vmul.f32 0.5, %v1787_v41 }
 0x380   :  { %v2184_v46 = vadd.f32 0.5, %v818_v37  ;;  %v1159_v41 = vmul.f32 %v1158_v40, %v1153_v57 }
 0x381   :  { %v2176_v3 = vadd.f32 0.5, %v820_v44  ;;  %1681 = vmatprep.subr.mxu0 %v2174_v43  ;;  %v1163_v44 = vpop.permute.xlu1 %1162  ;;  %v829_v57 = vsub.f32 1.0, %v2174_v43 }
 0x382   :  { %1682 = vmatpush3.msra.mxu0 %v2174_v43  ;;  %v1169_v58 = vmul.f32 %v1168_v42, %v1163_v44 }
 0x383   :  { %1683 = vmatprep.subr.mxu0 %v2176_v3 }
 0x384   :  { %1684 = vmatpush3.msra.mxu0 %v2176_v3 }
 0x385   :  { %1685 = vmatprep.subr.mxu0 %v2180_v45  ;;  %v990_v30 = vpop.permute.xlu1 %989 }
 0x386   :  { %1686 = vmatpush3.msra.mxu0 %v2180_v45 }
 0x387   :  { %1687 = vmatprep.subr.mxu0 %v2184_v46 }
 0x388   :  { %1688 = vmatpush3.msra.mxu0 %v2184_v46 }
 0x389   :  { %1690 = vmatmul.mubr.msk.f32.vlgmr.msra.gmra.mxu0 %vm230_vm1, %v2191_v6  ;;  %v995_v31 = vpop.permute.xlu1 %994 }
 0x38a   :  { %1692 = vmatprep.mubr.msk.f32.mxu0 %vm230_vm1, %v2197_v47 }
 0x38d   :  { %1693 = vmatmul.mubr.msk.f32.gmra.mxu0 %vm230_vm1, %v2207_v9 }
 0x38e   :  { %1722 = vmatprep.mubr.msk.f32.mxu0 %vm230_vm1, %v834_v29  ;;  %v1140_v29 = vmul.f32 %v1138_v4, %v2117_v62 }
 0x390   :  { %v1148_v33 = vrot.slane %v1140_v29, %v1090_v55  ;;  %v2253_v29 = vld [vmem:[%s2316_s11 + $0x8] sm:$0xff]  ;;  %s1830_s11 = smov [#allocation2]  }
 0x391   :  { %s1479_s28 = sshll.u32 %s1830_s11, 4  ;;  %s1480_s28 = int_to_ptr.vmem [resolvable:$true] %s1479_s28 }
 0x392   :  { %v1149_v36 = vmul.f32 %v1148_v33, %v1143_v35  ;;  %s1796_s29 = scalar_lea.vmem %s1480_s28, 64  ;;  %p1801_p1 = scmp.lt.s32.totalorder %s1480_s28, %s1480_s28 }
 0x393   :  { %p1797_p0 = scmp.ne.s32.totalorder %s1480_s28, %s1796_s29  ;;  %p1802_p2 = scmp.lt.s32.totalorder %s1796_s29, %s1796_s29 }
 0x394   :  { %v1150_v2 = vadd.f32 %v1149_v36, %v1137_v34 }
 0x395   :  { %p1803_p3 = por %p1802_p2, %p1801_p1 }
 0x396   :  { %v1160_v37 = vadd.f32 %v1159_v41, %v1150_v2  ;;  %v833_v41 = vmul.f32 %v829_v57, %v2174_v43 }
 0x397   :  { %p1804_p4 = pnand %p1803_p3, %p1797_p0 }
 0x398   :  { %v1170_v61 = vadd.f32 %v1169_v58, %v1160_v37  ;;  %v826_v37 = vsub.f32 1.0, %v2184_v46 }
 0x39a   :  { %v1180_v62 = vadd.f32 %v1179_v63, %v1170_v61  ;;  %v830_v63 = vmul.f32 %v826_v37, %v2184_v46 }
 0x42c   :  { %v676_v7 = vpop.f32.mrf.mxu0 }
 0x42d   :  { %v2234_v10 = vsub.f32 %v1180_v62, %v676_v7 }
 0x42e   :  { %v1672_v55 = vpop.f32.mrf.mxu0 }
 0x449   :  { %v1691_v12 = vpop.f32.mrf.mxu0 }
 0x44a   :  { %v946_v13 = vadd.f32 %v1691_v12, %v850_v56 }
 0x44b   :  { %v940_v14 = vpop.f32.mrf.mxu0 }
 0x44c   :  { %v941_v15 = vadd.f32 %v940_v14, %v845_v5  ;;  %v960_v16 = vmul.f32 0.5, %v946_v13 }
 0x44d   :  { %v1694_v17 = vpop.f32.mrf.mxu0 }
 0x44e   :  { %v956_v19 = vadd.f32 %v1694_v17, %v860_v60  ;;  %v959_v8 = vmul.f32 0.5, %v941_v15  ;;  %1788 = vtanh.f32 %v960_v16 }
 0x44f   :  { %v950_v20 = vpop.f32.mrf.mxu0 }
 0x450   :  { %v962_v21 = vmul.f32 0.5, %v956_v19  ;;  %v951_v11 = vadd.f32 %v950_v20, %v855_v48 }
 0x452   :  { %1790 = vtanh.f32 %v962_v21  ;;  %v961_v18 = vmul.f32 0.5, %v951_v11 }
 0x453   :  { %1792 = vtanh.f32 %v959_v8  ;;  %v1460_v8 = vmul.f32 %v2234_v10, %v2234_v10 }
 0x454   :  { %1794 = vtanh.f32 %v961_v18 }
 0x455   :  { %v1461_v20 = vsel %vm721_vm3, %v1460_v8, 0.0 }
 0x456   :  { %v1462_v11 = vrot.slane %v1461_v20, 4 }
 0x45b   :  { %v1789_v22 = vpop.eup %1788 }
 0x45c   :  { %v968_v56 = vmul.f32 0.5, %v1789_v22 }
 0x45e   :  { %v2242_v48 = vadd.f32 0.5, %v968_v56 }
 0x45f   :  { %v1791_v23 = vpop.eup %1790 }
 0x460   :  { %v1793_v25 = vpop.eup %1792  ;;  %v970_v24 = vmul.f32 0.5, %v1791_v23  ;;  %v976_v7 = vsub.f32 1.0, %v2242_v48 }
 0x461   :  { %v1795_v4 = vpop.eup %1794  ;;  %v967_v27 = vmul.f32 0.5, %v1793_v25 }
 0x462   :  { %v2236_v26 = vadd.f32 0.5, %v970_v24  ;;  %v969_v5 = vmul.f32 0.5, %v1795_v4  ;;  %v980_v15 = vmul.f32 %v976_v7, %v2242_v48  ;;  %v1463_v4 = vadd.f32 %v1462_v11, %v1461_v20 }
 0x463   :  { %v2246_v28 = vadd.f32 0.5, %v967_v27 }
 0x464   :  { %v2238_v60 = vadd.f32 0.5, %v969_v5  ;;  %1695 = vmatprep.subr.mxu1 %v2236_v26  ;;  %v978_v43 = vsub.f32 1.0, %v2236_v26 }
 0x465   :  { %1696 = vmatpush3.msra.mxu1 %v2236_v26  ;;  %v975_v13 = vsub.f32 1.0, %v2246_v28 }
 0x466   :  { %1697 = vmatprep.subr.mxu1 %v2238_v60  ;;  %v982_v55 = vmul.f32 %v978_v43, %v2236_v26 }
 0x467   :  { %1698 = vmatpush3.msra.mxu1 %v2238_v60  ;;  %v979_v17 = vmul.f32 %v975_v13, %v2246_v28 }
 0x468   :  { %1699 = vmatprep.subr.mxu1 %v2242_v48 }
 0x469   :  { %1700 = vmatpush3.msra.mxu1 %v2242_v48 }
 0x46a   :  { %1701 = vmatprep.subr.mxu1 %v2246_v28 }
 0x46b   :  { %1702 = vmatpush3.msra.mxu1 %v2246_v28 }
 0x46c   :  { %1704 = vmatmul.mubr.msk.f32.vlgmr.msra.gmra.mxu1 %vm230_vm1, %v2253_v29  ;;  %1706 = vmatprep.subr.msk.mxu1 %vm721_vm3, %v1180_v62 }
 0x46d   :  { %1707 = vmatpush3.msk.msra.mxu1 %vm721_vm3, %v1180_v62  ;;  %1708 = vmatprep.mubr.msk.f32.mxu1 %vm708_vm4, %v2130_v51 }
 0x470   :  { %1709 = vmatmul.mubr.msk.f32.vlgmr.msra.gmra.mxu1 %vm708_vm4, %v2139_v52 }
 0x471   :  { %1711 = vmatprep.mubr.msk.f32.mxu1 %vm708_vm4, %v2144_v53  ;;  %v828_v53 = vsub.f32 1.0, %v2176_v3 }
 0x473   :  { %v832_v50 = vmul.f32 %v828_v53, %v2176_v3 }
 0x474   :  { %1712 = vmatmul.mubr.msk.f32.gmra.mxu1 %vm708_vm4, %v2153_v54 }
 0x475   :  { %1736 = vmatprep.mubr.msk.f32.mxu1 %vm230_vm1, %v2215_v49  ;;  %v827_v49 = vsub.f32 1.0, %v2180_v45 }
 0x477   :  { %v831_v59 = vmul.f32 %v827_v49, %v2180_v45  ;;  %v977_v45 = vsub.f32 1.0, %v2238_v60 }
 0x479   :  { %v981_v14 = vmul.f32 %v977_v45, %v2238_v60  ;;  %v1464_v60 = vrot.slane %v1463_v4, 2 }
 0x52c   :  { %v1705_v32 = vpop.f32.mrf.mxu1 }
 0x52d   :  { %v1075_v33 = vadd.f32 %v1705_v32, %v995_v31 }
 0x52e   :  { %v1069_v34 = vpop.f32.mrf.mxu1 }
 0x52f   :  { %v1438_v35 = vsub.f32 %v1075_v33, %v1909_v0  ;;  %v1070_v51 = vadd.f32 %v1069_v34, %v990_v30 }
 0x530   :  { %v1710_v52 = vpop.f32.mrf.mxu1 }
 0x531   :  { %v1437_v36 = vsub.f32 %v1070_v51, %v1914_v1  ;;  %v1443_v54 = vmul.f32 %v1438_v35, %v1438_v35  ;;  %v1270_v61 = vmul.f32 %v1710_v52, %v831_v59 }
 0x532   :  { %v1250_v40 = vpop.f32.mrf.mxu1 }
 0x533   :  { %v1442_v2 = vmul.f32 %v1437_v36, %v1437_v36  ;;  %v1269_v62 = vmul.f32 %v1250_v40, %v830_v63 }
 0x534   :  { %v1713_v42 = vpop.f32.mrf.mxu1 }
 0x535   :  { %v1444_v44 = vadd.f32 %v1443_v54, %v1442_v2  ;;  %v1272_v0 = vmul.f32 %v1713_v42, %v833_v41 }
 0x536   :  { %v1260_v58 = vpop.f32.mrf.mxu1 }
 0x537   :  { %v1271_v1 = vmul.f32 %v1260_v58, %v832_v50  ;;  %1714 = vmatprep.subr.mxu0 %v1272_v0  ;;  %v1445_v21 = vrot.slane %v1444_v44, 4 }
 0x538   :  { %1715 = vmatpush3.msra.mxu0 %v1272_v0 }
 0x539   :  { %1716 = vmatprep.subr.mxu0 %v1271_v1  ;;  %v1446_v25 = vadd.f32 %v1445_v21, %v1444_v44 }
 0x53a   :  { %1717 = vmatpush3.msra.mxu0 %v1271_v1 }
 0x53b   :  { %1718 = vmatprep.subr.mxu0 %v1270_v61  ;;  %v1447_v5 = vrot.slane %v1446_v25, 2 }
 0x53c   :  { %1719 = vmatpush3.msra.mxu0 %v1270_v61 }
 0x53d   :  { %1720 = vmatprep.subr.mxu0 %v1269_v62  ;;  %v1448_v28 = vadd.f32 %v1447_v5, %v1446_v25 }
 0x53e   :  { %1721 = vmatpush3.msra.mxu0 %v1269_v62 }
 0x53f   :  { %1723 = vmatmul.mubr.msk.f32.vlgmr.msra.gmra.mxu0 %vm230_vm1, %v2191_v6  ;;  %v1449_v32 = vrot.slane %v1448_v28, 1 }
 0x540   :  { %1725 = vmatprep.mubr.msk.f32.mxu0 %vm230_vm1, %v2197_v47 }
 0x543   :  { %1726 = vmatmul.mubr.msk.f32.gmra.mxu0 %vm230_vm1, %v2207_v9 }
 0x5ff   :  { %v1724_v3 = vpop.f32.mrf.mxu0 }
 0x600   :  { %v1359_v16 = vmul.f32 %v1724_v3, %v980_v15 }
 0x601   :  { %v1339_v46 = vpop.f32.mrf.mxu0 }
 0x602   :  { %v1358_v19 = vmul.f32 %v1339_v46, %v979_v17 }
 0x603   :  { %v1727_v12 = vpop.f32.mrf.mxu0 }
 0x604   :  { %v1361_v6 = vmul.f32 %v1727_v12, %v982_v55 }
 0x605   :  { %v1349_v47 = vpop.f32.mrf.mxu0 }
 0x606   :  { %v1360_v9 = vmul.f32 %v1349_v47, %v981_v14  ;;  %1728 = vmatprep.subr.mxu1 %v1361_v6 }
 0x607   :  { %1729 = vmatpush3.msra.mxu1 %v1361_v6 }
 0x608   :  { %1730 = vmatprep.subr.mxu1 %v1360_v9 }
 0x609   :  { %1731 = vmatpush3.msra.mxu1 %v1360_v9 }
 0x60a   :  { %1732 = vmatprep.subr.mxu1 %v1359_v16 }
 0x60b   :  { %1733 = vmatpush3.msra.mxu1 %v1359_v16 }
 0x60c   :  { %1734 = vmatprep.subr.mxu1 %v1358_v19 }
 0x60d   :  { %1735 = vmatpush3.msra.mxu1 %v1358_v19 }
 0x60e   :  { %1737 = vmatmul.mubr.msk.f32.vlgmr.msra.gmra.mxu1 %vm230_vm1, %v2253_v29  ;;  %v1465_v29 = vadd.f32 %v1464_v60, %v1463_v4 }
 0x610   :  { %v1466_v33 = vrot.slane %v1465_v29, 1 }
 0x612   :  { %v1467_v35 = vadd.f32 %v1466_v33, %v1465_v29 }
 0x6ce   :  { %v1738_v18 = vpop.f32.mrf.mxu1 }
 0x6cf   :  { %v1440_v22 = vsub.f32 %v1738_v18, %v2083_v38  ;;  %v1450_v38 = vadd.f32 %v1449_v32, %v1448_v28 }
 0x6d0   :  { %v1428_v23 = vpop.f32.mrf.mxu1 }
 0x6d1   :  { %v1439_v24 = vsub.f32 %v1428_v23, %v2090_v39  ;;  %v1452_v56 = vmul.f32 %v1440_v22, %v1440_v22 }
 0x6d3   :  { %v1451_v26 = vmul.f32 %v1439_v24, %v1439_v24 }
 0x6d5   :  { %v1453_v27 = vadd.f32 %v1452_v56, %v1451_v26 }
 0x6d7   :  { %v1454_v48 = vrot.slane %v1453_v27, 4 }
 0x6d9   :  { %v1455_v10 = vadd.f32 %v1454_v48, %v1453_v27 }
 0x6db   :  { %v1456_v30 = vrot.slane %v1455_v10, 2 }
 0x6dd   :  { %v1457_v31 = vadd.f32 %v1456_v30, %v1455_v10 }
 0x6df   :  { %v1458_v34 = vrot.slane %v1457_v31, 1 }
 0x6e1   :  { %v1459_v39 = vadd.f32 %v1458_v34, %v1457_v31 }
 0x6e3   :  { %v1469_v51 = vsel %vm1468_vm5, %v1450_v38, %v1459_v39 }
 0x6e4   :  { %v1471_v57 = vsel %vm1470_vm6, %v1469_v51, %v1467_v35 }
 0x6e5   :  { %1472 = vst [vmem:[#allocation2] sm:$0x7] %v1471_v57 }
 0x6e6   :  { %1807 = shalt.err (!%p1804_p4)
}
 0x6e7   :  { %1482 = dma.vmem_to_hbm [thread:$0]  %s1480_s28, 64, %s2319_s14, [#allocation3]  }
 0x6e8   :  { %1816 = dma.done.wait [#allocation3], 64  }
 0x6e9   :  { %1817 = vsyncadd [#allocation3], 4294967232 }
 0x6ea   :  { %1486 = vsyncpa [#allocation3], 1 }

</bundles_post_ra>
